<compile_context>
chip_gen: v7x
topology: tpu7x:2x2x1
jax: 0.10.0
libtpu: 0.0.40
codegen_flags: <defaults>
</compile_context>

<pallas_src>
import functools

import numpy as np
import jax
import jax.numpy as jnp
from jax.experimental import pallas as pl
from jax.experimental.pallas import tpu as pltpu


def _round_up(n: int, m: int) -> int:
    return ((n + m - 1) // m) * m


# ----------------------------- Pallas kernels --------------------------------

def linear_kernel(x_ref, w_ref, b_ref, logits_ref):
    """Inference path: logits = x @ W + b (MXU matmul, f32 accumulation)."""
    logits_ref[...] = (
        jnp.dot(x_ref[...], w_ref[...], preferred_element_type=jnp.float32)
        + b_ref[...]
    )


def fused_linear_ce_kernel(x_ref, w_ref, b_ref, y_ref, logits_ref, loss_ref,
                           *, num_classes, batch):
    """Training path: logits = x @ W + b, loss = mean CE(logits, y).

    One MXU matmul feeds both the logits output and a numerically stable
    log-softmax cross-entropy (padded class columns and padded batch rows are
    masked out of the reduction).
    """
    logits = (
        jnp.dot(x_ref[...], w_ref[...], preferred_element_type=jnp.float32)
        + b_ref[...]
    )                                                     # (Bp, Cp) f32
    logits_ref[...] = logits                              # lane-dense store

    bp, cp = logits.shape                                 # static Python ints
    cls = jax.lax.broadcasted_iota(jnp.int32, (bp, cp), 1)

    # Mask padded class columns so they never contribute to max / exp / sum.
    masked = jnp.where(cls < num_classes, logits, jnp.float32(-1e30))

    m = jnp.max(masked, axis=-1, keepdims=True)           # XLU reduce
    z = masked - m
    lse = jnp.log(jnp.sum(jnp.exp(z), axis=-1, keepdims=True))   # EUP exp/log
    logp = z - lse                                         # (Bp, Cp)

    # One-hot target via a single broadcast compare; drop padded batch rows.
    y_col = y_ref[...]                                     # (Bp, 1) int32
    row_ok = jax.lax.broadcasted_iota(jnp.int32, (bp, 1), 0) < batch
    hit = (cls == y_col) & row_ok                          # (Bp, Cp) bool
    nll = jnp.where(hit, -logp, jnp.float32(0.0))

    # Mean over the real batch: multiply by a compile-time constant 1/batch.
    loss_ref[0] = jnp.sum(nll) * jnp.float32(1.0 / batch)


# ----------------------------- wrappers ---------------------------------------

def _pad_operands(x, w, b):
    B, D = x.shape
    C = w.shape[1]
    Bp = _round_up(B, 8)        # sublane-aligned batch
    Dp = _round_up(D, 128)      # lane-aligned contraction dim
    Cp = _round_up(C, 128)      # lane-dense class dim (no masked partial stores)

    xp = jnp.pad(x.astype(jnp.float32), ((0, Bp - B), (0, Dp - D)))
    wp = jnp.pad(w.astype(jnp.float32), ((0, Dp - D), (0, Cp - C)))
    bp_ = jnp.pad(b.astype(jnp.float32).reshape(1, C), ((0, 0), (0, Cp - C)))
    return xp, wp, bp_, (B, C, Bp, Cp)


def _fused_forward(x, w, b, y):
    """One pallas_call producing (logits, scalar mean-CE loss)."""
    xp, wp, bp_, (B, C, Bp, Cp) = _pad_operands(x, w, b)
    yp = jnp.pad(y.astype(jnp.int32), (0, Bp - B)).reshape(Bp, 1)

    kernel = functools.partial(fused_linear_ce_kernel, num_classes=C, batch=B)
    logits_p, loss = pl.pallas_call(
        kernel,
        out_shape=(
            jax.ShapeDtypeStruct((Bp, Cp), jnp.float32),   # padded logits
            jax.ShapeDtypeStruct((1,), jnp.float32),       # scalar loss (SMEM)
        ),
        in_specs=[
            pl.BlockSpec(memory_space=pltpu.MemorySpace.VMEM),   # x  (Bp, Dp)
            pl.BlockSpec(memory_space=pltpu.MemorySpace.VMEM),   # W  (Dp, Cp)
            pl.BlockSpec(memory_space=pltpu.MemorySpace.VMEM),   # b  (1, Cp)
            pl.BlockSpec(memory_space=pltpu.MemorySpace.VMEM),   # y  (Bp, 1)
        ],
        out_specs=(
            pl.BlockSpec(memory_space=pltpu.MemorySpace.VMEM),   # logits (Bp, Cp)
            pl.BlockSpec(memory_space=pltpu.MemorySpace.SMEM),   # loss   (1,)
        ),
    )(xp, wp, bp_, yp)
    # TODO(synk): for large (B, D, C) switch to a 3-axis grid (B, C "parallel";
    # D "arbitrary", last) with an f32 VMEM accumulator + pl.when init/finalize;
    # single-shot VMEM-resident is optimal at these tiny shapes.
    return logits_p[:B, :C], loss[0]


def _logits_forward(x, w, b):
    """Inference-only pallas_call: no wasted softmax / CE work when y is None."""
    xp, wp, bp_, (B, C, Bp, Cp) = _pad_operands(x, w, b)
    logits_p = pl.pallas_call(
        linear_kernel,
        out_shape=jax.ShapeDtypeStruct((Bp, Cp), jnp.float32),
        in_specs=[
            pl.BlockSpec(memory_space=pltpu.MemorySpace.VMEM),   # x
            pl.BlockSpec(memory_space=pltpu.MemorySpace.VMEM),   # W
            pl.BlockSpec(memory_space=pltpu.MemorySpace.VMEM),   # b
        ],
        out_specs=pl.BlockSpec(memory_space=pltpu.MemorySpace.VMEM),
    )(xp, wp, bp_)
    return logits_p[:B, :C]


def torch_model_forward(x, w, b, y=None):
    """Mirrors TorchModel.forward: logits if y is None, else mean CE loss.
    Always exactly one pallas_call."""
    if y is None:
        return _logits_forward(x, w, b)
    _, loss = _fused_forward(x, w, b, y)
    return loss


def torch_model_forward_both(x, w, b, y):
    """Fused training-path variant: (logits, loss) from a single pallas_call."""
    return _fused_forward(x, w, b, y)


# ----------------------------- main ------------------------------------------

if __name__ == "__main__":
    INPUT_SIZE = 32
    NUM_CLASSES = 5
    BATCH = 8

    key = jax.random.PRNGKey(0)
    kx, kw, kb, ky = jax.random.split(key, 4)

    # Deterministic parameter init (PyTorch-style uniform(-1/sqrt(fan_in), ...))
    bound = 1.0 / np.sqrt(INPUT_SIZE)
    w = jax.random.uniform(kw, (INPUT_SIZE, NUM_CLASSES), jnp.float32, -bound, bound)
    b = jax.random.uniform(kb, (1, NUM_CLASSES), jnp.float32, -bound, bound)

    x = jax.random.normal(kx, (BATCH, INPUT_SIZE), jnp.float32)
    y = jax.random.randint(ky, (BATCH,), 0, NUM_CLASSES, jnp.int32)

    # Fused training path: ONE pallas_call produces both logits and the loss.
    logits, loss = torch_model_forward_both(x, w, b, y)
    logits = jax.block_until_ready(logits)
    loss = jax.block_until_ready(loss)

    # Module-style dispatch (each is also a single pallas_call).
    logits_only = jax.block_until_ready(torch_model_forward(x, w, b))
    loss_only = jax.block_until_ready(torch_model_forward(x, w, b, y))

    # Plain-JAX reference.
    ref_logits = x @ w + b
    zm = ref_logits - ref_logits.max(axis=-1, keepdims=True)
    ref_logp = zm - jnp.log(jnp.exp(zm).sum(axis=-1, keepdims=True))
    ref_loss = -jnp.mean(ref_logp[jnp.arange(BATCH), y])

    assert logits.shape == (BATCH, NUM_CLASSES)
    assert np.allclose(np.asarray(logits), np.asarray(ref_logits), atol=1e-5)
    assert np.allclose(np.asarray(logits_only), np.asarray(ref_logits), atol=1e-5)
    assert np.allclose(float(loss), float(ref_loss), atol=1e-5)
    assert np.allclose(float(loss_only), float(ref_loss), atol=1e-5)

    print("KERNEL_OK")
</pallas_src>

<mosaic_0001>
module attributes {stable_mosaic.version = 11 : i64} {
  func.func @fused_linear_ce_kernel(%arg0: memref<8x128xf32, #tpu.memory_space<vmem>>, %arg1: memref<128x128xf32, #tpu.memory_space<vmem>>, %arg2: memref<1x128xf32, #tpu.memory_space<vmem>>, %arg3: memref<8x1xi32, #tpu.memory_space<vmem>>, %arg4: memref<8x128xf32, #tpu.memory_space<vmem>>, %arg5: memref<1xf32, #tpu.memory_space<smem>>) attributes {dimension_semantics = [], scalar_prefetch = 0 : i64, scratch_operands = 0 : i64, tpu.core_type = #tpu.core_type<tc>} {
    %c0 = arith.constant 0 : index
    %c0_0 = arith.constant 0 : index
    %0 = vector.load %arg0[%c0, %c0_0] : memref<8x128xf32, #tpu.memory_space<vmem>>, vector<8x128xf32>
    %c0_1 = arith.constant 0 : index
    %c0_2 = arith.constant 0 : index
    %1 = vector.load %arg1[%c0_1, %c0_2] : memref<128x128xf32, #tpu.memory_space<vmem>>, vector<128x128xf32>
    %cst = arith.constant dense<0.000000e+00> : vector<8x128xf32>
    %2 = tpu.matmul %0, %1, %cst {dimension_numbers = #tpu.dot_dimension_numbers<[1], [0], [0], [1], [0, 0, 1, 1], [], []>} : vector<8x128xf32>, vector<128x128xf32>, vector<8x128xf32> -> vector<8x128xf32>
    %c0_3 = arith.constant 0 : index
    %c0_4 = arith.constant 0 : index
    %3 = vector.load %arg2[%c0_3, %c0_4] : memref<1x128xf32, #tpu.memory_space<vmem>>, vector<1x128xf32>
    %4 = vector.broadcast %3 : vector<1x128xf32> to vector<8x128xf32>
    %5 = arith.addf %2, %4 : vector<8x128xf32>
    %c0_5 = arith.constant 0 : index
    %c0_6 = arith.constant 0 : index
    %6 = vector.load %arg4[%c0_5, %c0_6] : memref<8x128xf32, #tpu.memory_space<vmem>>, vector<8x128xf32>
    tpu.vector_store %arg4[%c0_5, %c0_6], %5 {strides = array<i32>} : memref<8x128xf32, #tpu.memory_space<vmem>>, vector<8x128xf32>,
    %7 = tpu.iota {dimensions = array<i32: 1>} : vector<8x128xi32>
    %c5_i32 = arith.constant 5 : i32
    %8 = vector.broadcast %c5_i32 : i32 to vector<8x128xi32>
    %9 = arith.cmpi slt, %7, %8 : vector<8x128xi32>
    %cst_7 = arith.constant -1.000000e+30 : f32
    %10 = vector.broadcast %cst_7 : f32 to vector<8x128xf32>
    %11 = arith.select %9, %5, %10 : vector<8x128xi1>, vector<8x128xf32>
    %cst_8 = arith.constant dense<0xFF800000> : vector<8xf32>
    %12 = vector.multi_reduction <maximumf>, %11, %cst_8 [1] : vector<8x128xf32> to vector<8xf32>
    %13 = vector.shape_cast %12 : vector<8xf32> to vector<8x1xf32>
    %14 = vector.broadcast %13 : vector<8x1xf32> to vector<8x128xf32>
    %15 = arith.subf %11, %14 : vector<8x128xf32>
    %16 = math.exp %15 : vector<8x128xf32>
    %cst_9 = arith.constant dense<0.000000e+00> : vector<8xf32>
    %17 = vector.multi_reduction <add>, %16, %cst_9 [1] : vector<8x128xf32> to vector<8xf32>
    %18 = vector.shape_cast %17 : vector<8xf32> to vector<8x1xf32>
    %19 = math.log %18 : vector<8x1xf32>
    %20 = vector.broadcast %19 : vector<8x1xf32> to vector<8x128xf32>
    %21 = arith.subf %15, %20 : vector<8x128xf32>
    %c0_10 = arith.constant 0 : index
    %c0_11 = arith.constant 0 : index
    %22 = vector.load %arg3[%c0_10, %c0_11] : memref<8x1xi32, #tpu.memory_space<vmem>>, vector<8x1xi32>
    %23 = tpu.iota {dimensions = array<i32: 0>} : vector<8x1xi32>
    %c8_i32 = arith.constant 8 : i32
    %24 = vector.broadcast %c8_i32 : i32 to vector<8x1xi32>
    %25 = arith.cmpi slt, %23, %24 : vector<8x1xi32>
    %26 = vector.broadcast %22 : vector<8x1xi32> to vector<8x128xi32>
    %27 = arith.cmpi eq, %7, %26 : vector<8x128xi32>
    %28 = vector.broadcast %25 : vector<8x1xi1> to vector<8x128xi1>
    %29 = arith.andi %27, %28 : vector<8x128xi1>
    %cst_12 = arith.constant 0.000000e+00 : f32
    %30 = vector.broadcast %cst_12 : f32 to vector<8x128xf32>
    %31 = arith.subf %30, %21 : vector<8x128xf32>
    %cst_13 = arith.constant 0.000000e+00 : f32
    %32 = vector.broadcast %cst_13 : f32 to vector<8x128xf32>
    %33 = arith.select %29, %31, %32 : vector<8x128xi1>, vector<8x128xf32>
    %34 = vector.shape_cast %33 : vector<8x128xf32> to vector<1x8x128xf32>
    %cst_14 = arith.constant dense<0.000000e+00> : vector<1xf32>
    %35 = vector.multi_reduction <add>, %34, %cst_14 [1, 2] : vector<1x8x128xf32> to vector<1xf32>
    %36 = vector.shape_cast %35 : vector<1xf32> to vector<1x1x1xf32>
    %37 = vector.extract %36[0, 0, 0] : f32 from vector<1x1x1xf32>
    %cst_15 = arith.constant 1.250000e-01 : f32
    %38 = arith.mulf %37, %cst_15 : f32
    %c0_16 = arith.constant 0 : index
    %39 = memref.load %arg5[%c0_16] : memref<1xf32, #tpu.memory_space<smem>>
    memref.store %38, %arg5[%c0_16] : memref<1xf32, #tpu.memory_space<smem>>
    return
  }
}

</mosaic_0001>

<bundles_post_ra>
// kernel: tpu_custom_call.1
= control target key start
LH: loop header
LB: loop body
LE: loop exit
PB: predicated region body
PF: predicated region fallthrough
CT: control target
= control target key end

     0   :  { %11 = vsyncpa [#allocation3], 0  ;;  %s435_s0 = inlined_call_operand.vmem [shape: f32[8,128], index: 0, kind: input, shape index: {}]   ;;  %s436_s1 = inlined_call_operand.hbm [shape: f32[128,128], index: 1, kind: input, shape index: {}]   ;;  %s437_s2 = inlined_call_operand.vmem [shape: f32[1,128], index: 2, kind: input, shape index: {}]   ;;  %s438_s3 = inlined_call_operand.vmem [shape: s32[8,1], index: 3, kind: input, shape index: {}]   ;;  %s439_s4 = inlined_call_operand.hbm [shape: f32[8,128], index: 4, kind: output, shape index: {0}]   ;;  %s440_s5 = inlined_call_operand.hbm [shape: f32[1], index: 5, kind: output, shape index: {1}]  }
   0x1   :  { %12 = vsyncpa [#allocation4], 0 }
   0x2   :  { %13 = vsyncpa [#allocation5], 0  ;;  %s351_s18 = smov [#allocation2]   ;;  %s291_s22 = scalar_lea.hbm %s436_s1, 2048 }
   0x3   :  { %s21_s19 = sshll.u32 %s351_s18, 4  ;;  %p292_p0 = scmp.ne.s32.totalorder %s436_s1, %s291_s22  ;;  %s22_s19 = int_to_ptr.vmem [resolvable:$true] %s21_s19 }
   0x4   :  { %p295_p1 = scmp.lt.u32.totalorder %s291_s22, %s436_s1 }
   0x6   :  { %p297_p2 = pnand %p295_p1, %p292_p0 }
   0x8   :  { %300 = shalt.err (!%p297_p2)
}
   0x9   :  { %s301_s27 = scalar_lea.vmem %s22_s19, 2048  ;;  %p306_p4 = scmp.lt.s32.totalorder %s22_s19, %s22_s19 }
   0xa   :  { %p302_p3 = scmp.ne.s32.totalorder %s22_s19, %s301_s27  ;;  %p307_p5 = scmp.lt.s32.totalorder %s301_s27, %s301_s27 }
   0xc   :  { %p308_p6 = por %p307_p5, %p306_p4 }
   0xe   :  { %p309_p7 = pnand %p308_p6, %p302_p3 }
  0x10   :  { %312 = shalt.err (!%p309_p7)
}
  0x11   :  { %s352_s28 = smov 128   ;;  %s353_s29 = smov 8  }
  0x12   :  { %27 = dma.hbm_to_vmem [thread:$0]  %s436_s1, 2048, %s22_s19, [#allocation3], %s352_s28, %s352_s28, %s353_s29  }
  0x13   :  { %345 = dma.done.wait [#allocation3], 2048  }
  0x14   :  { %346 = vsyncadd [#allocation3], 4294965248  ;;  %v354_v0 = vmov 0.0|0.0   ;;  %vm355_vm0 = vmmov 0   ;;  %v356_v1 = vmov 0.0   ;;  %v36_v2 = vld [vmem:[#allocation2] sm:$0xff]  ;;  %v130_v27 = vlaneseq }
  0x15   :  { %250 = vmatprep.subr.bf16.mxu0 %v354_v0  ;;  %247 = vmatprep.mubr.msk.f32.mxu0 %vm355_vm0, %v356_v1  ;;  %v37_v3 = vld [vmem:[#allocation2 + $0x8] sm:$0xff]  ;;  %v38_v4 = vld [vmem:[#allocation2 + $0x10] sm:$0xff]  ;;  %v39_v6 = vld [vmem:[#allocation2 + $0x18] sm:$0xff]  ;;  %v357_v35 = vmov 0  }
  0x16   :  { %v251_v5 = vpack.c.bf16 %v37_v3, %v36_v2  ;;  %v254_v7 = vpack.c.bf16 %v39_v6, %v38_v4  ;;  %v40_v8 = vld [vmem:[#allocation2 + $0x20] sm:$0xff]  ;;  %v41_v9 = vld [vmem:[#allocation2 + $0x28] sm:$0xff]  ;;  %v42_v11 = vld [vmem:[#allocation2 + $0x30] sm:$0xff]  ;;  %v131_v28 = vand.u32 127, %v130_v27  ;;  %285 = vset.pattern.permute.xlu1 %v357_v35  ;;  %286 = vset.pattern.permute.xlu0 %v357_v35 }
  0x17   :  { %v257_v10 = vpack.c.bf16 %v41_v9, %v40_v8  ;;  %v43_v12 = vld [vmem:[#allocation2 + $0x38] sm:$0xff]  ;;  %v44_v14 = vld [vmem:[#allocation2 + $0x40] sm:$0xff]  ;;  %v45_v15 = vld [vmem:[#allocation2 + $0x48] sm:$0xff] }
  0x18   :  { %252 = vmatpush3.bf16.msra.mxu0 %v251_v5  ;;  %v260_v13 = vpack.c.bf16 %v43_v12, %v42_v11  ;;  %v263_v16 = vpack.c.bf16 %v45_v15, %v44_v14  ;;  %v46_v17 = vld [vmem:[#allocation2 + $0x50] sm:$0xff]  ;;  %v47_v18 = vld [vmem:[#allocation2 + $0x58] sm:$0xff]  ;;  %v48_v20 = vld [vmem:[#allocation2 + $0x60] sm:$0xff]  ;;  %vm132_vm1 = vcmp.lt.s32.totalorder %v131_v28, 5 }
  0x19   :  { %253 = vmatprep.subr.bf16.mxu0 %v354_v0  ;;  %v266_v19 = vpack.c.bf16 %v47_v18, %v46_v17  ;;  %v49_v21 = vld [vmem:[#allocation2 + $0x68] sm:$0xff]  ;;  %v50_v23 = vld [vmem:[#allocation2 + $0x70] sm:$0xff]  ;;  %v51_v24 = vld [vmem:[#allocation2 + $0x78] sm:$0xff] }
  0x1a   :  { %v269_v22 = vpack.c.bf16 %v49_v21, %v48_v20  ;;  %v272_v25 = vpack.c.bf16 %v51_v24, %v50_v23  ;;  %v35_v26 = vld [vmem:[%s435_s0] sm:$0xff]  ;;  %s358_s0 = smov [#allocation6]  }
  0x1b   :  { %v197_v29 = vld [vmem:[%s437_s2] ss:$0 sm:$0xff]  ;;  %s175_s2 = sshll.u32 %s358_s0, 4  ;;  %s176_s2 = int_to_ptr.vmem [resolvable:$true] %s175_s2 }
  0x1c   :  { %255 = vmatpush3.bf16.msra.mxu0 %v254_v7  ;;  %v144_v34 = vld [vmem:[%s438_s3] sm:$0xff]  ;;  %s313_s3 = scalar_lea.vmem %s176_s2, 128  ;;  %p318_p9 = scmp.lt.s32.totalorder %s176_s2, %s176_s2 }
  0x1d   :  { %256 = vmatprep.subr.bf16.mxu0 %v354_v0  ;;  %149 = vperm.xlu1 %285, %v144_v34   ;;  %p314_p8 = scmp.ne.s32.totalorder %s176_s2, %s313_s3  ;;  %p319_p10 = scmp.lt.s32.totalorder %s313_s3, %s313_s3 }
  0x1f   :  { %p320_p11 = por %p319_p10, %p318_p9 }
  0x20   :  { %258 = vmatpush3.bf16.msra.mxu0 %v257_v10 }
  0x21   :  { %259 = vmatprep.subr.bf16.mxu0 %v354_v0  ;;  %p321_p12 = pnand %p320_p11, %p314_p8 }
  0x24   :  { %261 = vmatpush3.bf16.msra.mxu0 %v260_v13 }
  0x25   :  { %262 = vmatprep.subr.bf16.mxu0 %v354_v0 }
  0x28   :  { %264 = vmatpush3.bf16.msra.mxu0 %v263_v16 }
  0x29   :  { %265 = vmatprep.subr.bf16.mxu0 %v354_v0 }
  0x2c   :  { %267 = vmatpush3.bf16.msra.mxu0 %v266_v19 }
  0x2d   :  { %268 = vmatprep.subr.bf16.mxu0 %v354_v0 }
  0x30   :  { %270 = vmatpush3.bf16.msra.mxu0 %v269_v22 }
  0x31   :  { %271 = vmatprep.subr.bf16.mxu0 %v354_v0 }
  0x34   :  { %273 = vmatpush3.bf16.msra.mxu0 %v272_v25 }
  0x37   :  { %248 = vmatmul.mubr.f32.vlgmr.msra.gmra.mrb[0].mxu0 %v35_v26 }
  0x9c   :  { %v150_v43 = vpop.permute.xlu1 %149 }
  0x9d   :  { %vm151_vm2 = vcmp.eq.s32.totalorder %v131_v28, %v150_v43 }
 0x10a   :  { %v125_v30 = vpop.f32.mrb[0].mxu0 }
 0x10b   :  { %v126_v31 = vadd.f32 %v197_v29, %v125_v30  ;;  %v249_v32 = vpop.f32.mrb[1].mxu0 }
 0x10d   :  { %129 = vst [vmem:[#allocation6] sm:$0xff] %v126_v31  ;;  %v133_v33 = vsel %vm132_vm1, %v126_v31, -1e+30 }
 0x10e   :  { %134 = vmax.xlane.f32.xlu0 %v133_v33 }
 0x19b   :  { %v135_v36 = vpop.xlane.xlu0 %134 }
 0x19c   :  { %v136_v37 = vsub.f32 %v133_v33, %v135_v36 }
 0x19e   :  { %v137_v38 = vmul.f32 1.442695, %v136_v37 }
 0x1a0   :  { %287 = vpow2.f32 %v137_v38 }
 0x1aa   :  { %v288_v39 = vpop.eup %287 }
 0x1ab   :  { %139 = vadd.xlane.f32.xlu0 %v288_v39 }
 0x238   :  { %v140_v40 = vpop.xlane.xlu0 %139 }
 0x239   :  { %289 = vlog2.f32 %v140_v40 }
 0x243   :  { %v290_v41 = vpop.eup %289 }
 0x244   :  { %v142_v42 = vmul.f32 0.6931472, %v290_v41 }
 0x246   :  { %v143_v44 = vsub.f32 %v136_v37, %v142_v42 }
 0x248   :  { %v155_v45 = vsub.f32 0.0, %v143_v44 }
 0x24a   :  { %v156_v46 = vsel %vm151_vm2, %v155_v45, 0.0 }
 0x24b   :  { %157 = vadd.xlane.f32.xlu1 %v156_v46 }
 0x24c   :  { %324 = shalt.err (!%p321_p12)
}
 0x24d   :  { %s325_s14 = scalar_lea.hbm %s439_s4, 128 }
 0x24e   :  { %p326_p13 = scmp.ne.s32.totalorder %s439_s4, %s325_s14  ;;  %p329_p0 = scmp.lt.u32.totalorder %s325_s14, %s439_s4 }
 0x250   :  { %p331_p1 = pnand %p329_p0, %p326_p13 }
 0x252   :  { %334 = shalt.err (!%p331_p1)
}
 0x253   :  { %178 = dma.vmem_to_hbm [thread:$0]  %s176_s2, 128, %s439_s4, [#allocation4]  }
 0x254   :  { %s335_s25 = scalar_lea.hbm %s440_s5, 16 }
 0x255   :  { %p336_p2 = scmp.ne.s32.totalorder %s440_s5, %s335_s25  ;;  %p339_p3 = scmp.lt.u32.totalorder %s335_s25, %s440_s5 }
 0x257   :  { %p341_p4 = pnand %p339_p3, %p336_p2 }
 0x2d8   :  { %v158_v47 = vpop.xlane.xlu1 %157 }
 0x2d9   :  { %v159_v48 = vrot.slane %v158_v47, 4 }
 0x2db   :  { %v160_v49 = vadd.f32 %v159_v48, %v158_v47 }
 0x2dd   :  { %v161_v50 = vrot.slane %v160_v49, 2 }
 0x2df   :  { %v162_v51 = vadd.f32 %v161_v50, %v160_v49 }
 0x2e1   :  { %v163_v52 = vrot.slane %v162_v51, 1 }
 0x2e3   :  { %v164_v53 = vadd.f32 %v163_v52, %v162_v51 }
 0x2e5   :  { %274 = vpush %v164_v53 }
 0x316   :  { %s275_s21 = spop %274 }
 0x317   :  { %s166_s22 = smul.f32 0.125, %s275_s21 }
 0x319   :  { %168 = sst [smem:[#allocation7]] %s166_s22 }
 0x31a   :  { %344 = shalt.err (!%p341_p4)
}
 0x31b   :  { %s359_s29 = smov [#allocation7]  }
 0x31c   :  { %186 = dma.smem_to_hbm %s359_s29, 16, %s440_s5, [#allocation5]  }
 0x31d   :  { %347 = dma.done.wait [#allocation4], 128  }
 0x31e   :  { %348 = vsyncadd [#allocation4], 4294967168 }
 0x31f   :  { %349 = dma.done.wait [#allocation5], 16  }
 0x320   :  { %350 = vsyncadd [#allocation5], 4294967280 }
 0x321   :  { %193 = sfence }
 0x322   :  { %194 = vsyncpa [#allocation3], 1 }
 0x323   :  { %195 = vsyncpa [#allocation4], 1 }
 0x324   :  { %196 = vsyncpa [#allocation5], 1 }

</bundles_post_ra>
